<compile_context>
chip_gen: v6e
topology: v6e:2x2x1
jax: 0.10.0
libtpu: 0.0.40
codegen_flags: <defaults>
</compile_context>

<pallas_src>
import functools

import jax
import jax.numpy as jnp
from jax.experimental import pallas as pl
from jax.experimental.pallas import tpu as pltpu


# --------------------- kernel 1: per-prior pass (gridded) --------------------
def _per_prior_kernel(conf_ref, locp_ref, loct_ref, conft_ref,
                      mine_ref, posce_ref, sl1_ref,
                      *, num_classes, num_priors, tile_p):
    """Per prior-tile: cross entropy, smooth-L1, mining loss.  Lane = prior."""
    conf_t = conft_ref[...]                               # (B, Tp) int32
    pos = conf_t > 0                                      # (B, Tp)

    # ---- cross entropy per prior: logsumexp over classes (sublane axis) ----
    conf = conf_ref[...].astype(jnp.float32)              # (B, C, Tp)
    cmax = jnp.max(conf, axis=1)                          # (B, Tp)
    ssum = jnp.sum(jnp.exp(conf - cmax[:, None, :]), axis=1)
    # GT logit via an unrolled loop of C selects (no (B, P, C) iota).
    gt = jnp.zeros_like(cmax)
    for c in range(num_classes):
        gt = jnp.where(conf_t == c, conf[:, c, :], gt)
    ce = jnp.log(ssum) + cmax - gt                        # (B, Tp)

    # ---- smooth-L1 over the 4 box coords (sublanes), positives only --------
    d = locp_ref[...].astype(jnp.float32) - loct_ref[...].astype(jnp.float32)
    ad = jnp.abs(d)
    sl1 = jnp.where(ad < 1.0, 0.5 * d * d, ad - 0.5)      # (B, 4, Tp)
    sl1 = jnp.sum(sl1, axis=1)                            # (B, Tp)

    # ---- mask priors beyond the real prior count (lane padding) ------------
    gidx = (jax.lax.broadcasted_iota(jnp.int32, conf_t.shape, 1)
            + pl.program_id(0) * tile_p)
    valid = gidx < num_priors

    sl1_ref[...] = jnp.where(pos, sl1, 0.0)
    posce_ref[...] = jnp.where(pos, ce, 0.0)
    mine_ref[...] = jnp.where(jnp.logical_and(valid, jnp.logical_not(pos)),
                              ce, 0.0)


# ----------------- kernel 2: hard negative mining + reduction ----------------
def _mining_kernel(conft_ref, mine_ref, posce_ref, sl1_ref,
                   lossl_ref, lossc_ref,
                   *, negpos_ratio, num_priors, n_bisect=40):
    """loss_c = sum_pos(ce) + sum(top-k mining losses);  both /= max(N, 1)."""
    conf_t = conft_ref[...]                               # (B, Pp) int32
    mine = mine_ref[...]                                  # (B, Pp) f32
    posf = (conf_t > 0).astype(jnp.float32)

    num_pos = jnp.sum(posf, axis=1, keepdims=True)        # (B, 1)
    k = jnp.minimum(negpos_ratio * num_pos,
                    float(num_priors - 1))                # (B, 1)

    loss_l = jnp.sum(sl1_ref[...], axis=(0, 1), keepdims=True)    # (1, 1)
    pos_ce = jnp.sum(posce_ref[...], axis=(0, 1), keepdims=True)  # (1, 1)

    # Sum of the k largest mining losses per image via threshold bisection.
    # Invariant: count(mine > lo) >= k  and  count(mine > hi) < k  (for k>0).
    hi = jnp.max(mine, axis=1, keepdims=True)             # (B, 1)
    lo = jnp.full_like(hi, -1.0)

    def body(_, carry):
        lo, hi = carry
        mid = 0.5 * (lo + hi)
        cgt = jnp.sum((mine > mid).astype(jnp.float32), axis=1, keepdims=True)
        go_up = cgt >= k
        return jnp.where(go_up, mid, lo), jnp.where(go_up, hi, mid)

    lo, hi = jax.lax.fori_loop(0, n_bisect, body, (lo, hi))

    above = mine > hi
    cgt = jnp.sum(above.astype(jnp.float32), axis=1, keepdims=True)
    s_gt = jnp.sum(jnp.where(above, mine, 0.0), axis=1, keepdims=True)
    topk = jnp.where(k > 0.0, s_gt + (k - cgt) * hi, 0.0)           # (B, 1)

    loss_c = pos_ce + jnp.sum(topk, axis=(0, 1), keepdims=True)     # (1, 1)
    n_total = jnp.sum(num_pos, axis=(0, 1), keepdims=True)          # (1, 1)
    n = jnp.maximum(n_total, 1.0)   # guard: torch NaNs when there are no pos
    lossl_ref[...] = loss_l / n
    lossc_ref[...] = loss_c / n


# ------------------------------ wrapper ---------------------------------------
def multibox_losses(loc_data, conf_data, loc_t, conf_t, negpos_ratio,
                    *, tile_p=128):
    B, P, C = conf_data.shape

    # Lane-dense layout plumbing: priors on the 128-lane axis.
    conf_bcp = jnp.transpose(conf_data, (0, 2, 1))        # (B, C, P)
    locp = jnp.transpose(loc_data, (0, 2, 1))             # (B, 4, P)
    loct = jnp.transpose(loc_t, (0, 2, 1))                # (B, 4, P)
    conf_t = conf_t.astype(jnp.int32)                     # (B, P)

    nt = (P + tile_p - 1) // tile_p
    p_pad = nt * tile_p
    if p_pad != P:
        pad = p_pad - P
        conf_bcp = jnp.pad(conf_bcp, ((0, 0), (0, 0), (0, pad)))
        locp = jnp.pad(locp, ((0, 0), (0, 0), (0, pad)))
        loct = jnp.pad(loct, ((0, 0), (0, 0), (0, pad)))
        conf_t = jnp.pad(conf_t, ((0, 0), (0, pad)))

    vmem = pltpu.MemorySpace.VMEM
    pp_spec = pl.BlockSpec((B, tile_p), lambda i: (0, i))

    # Pass 1: per-prior quantities, tiled over priors, fully parallel grid.
    mine, posce, sl1 = pl.pallas_call(
        functools.partial(_per_prior_kernel, num_classes=C, num_priors=P,
                          tile_p=tile_p),
        grid=(nt,),
        in_specs=[pl.BlockSpec((B, C, tile_p), lambda i: (0, 0, i)),
                  pl.BlockSpec((B, 4, tile_p), lambda i: (0, 0, i)),
                  pl.BlockSpec((B, 4, tile_p), lambda i: (0, 0, i)),
                  pp_spec],
        out_specs=(pp_spec, pp_spec, pp_spec),
        out_shape=(jax.ShapeDtypeStruct((B, p_pad), jnp.float32),
                   jax.ShapeDtypeStruct((B, p_pad), jnp.float32),
                   jax.ShapeDtypeStruct((B, p_pad), jnp.float32)),
        compiler_params=pltpu.CompilerParams(
            dimension_semantics=("parallel",)),
    )(conf_bcp, locp, loct, conf_t)

    # Pass 2: hard-negative mining (O(P) bisection, no P^2 tensor) + reduce.
    loss_l, loss_c = pl.pallas_call(
        functools.partial(_mining_kernel, negpos_ratio=float(negpos_ratio),
                          num_priors=P),
        in_specs=[pl.BlockSpec(memory_space=vmem)] * 4,
        out_specs=(pl.BlockSpec(memory_space=vmem),
                   pl.BlockSpec(memory_space=vmem)),
        out_shape=(jax.ShapeDtypeStruct((1, 1), jnp.float32),
                   jax.ShapeDtypeStruct((1, 1), jnp.float32)),
    )(conf_t, mine, posce, sl1)
    return loss_l[0, 0], loss_c[0, 0]


# --------------------------- matching (JAX glue) -----------------------------
def _point_form(priors):
    return jnp.concatenate([priors[:, :2] - priors[:, 2:] / 2.0,
                            priors[:, :2] + priors[:, 2:] / 2.0], axis=1)


def _jaccard(box_a, box_b):
    max_xy = jnp.minimum(box_a[:, None, 2:], box_b[None, :, 2:])
    min_xy = jnp.maximum(box_a[:, None, :2], box_b[None, :, :2])
    wh = jnp.clip(max_xy - min_xy, 0.0)
    inter = wh[..., 0] * wh[..., 1]
    area_a = ((box_a[:, 2] - box_a[:, 0]) * (box_a[:, 3] - box_a[:, 1]))[:, None]
    area_b = ((box_b[:, 2] - box_b[:, 0]) * (box_b[:, 3] - box_b[:, 1]))[None, :]
    return inter / (area_a + area_b - inter)


def _encode(matched, priors, variances):
    g_cxcy = (matched[:, :2] + matched[:, 2:]) / 2.0 - priors[:, :2]
    g_cxcy = g_cxcy / (variances[0] * priors[:, 2:])
    g_wh = (matched[:, 2:] - matched[:, :2]) / priors[:, 2:]
    g_wh = jnp.log(g_wh) / variances[1]
    return jnp.concatenate([g_cxcy, g_wh], axis=1)


def _match_one(threshold, truths, priors, variances, labels):
    overlaps = _jaccard(truths, _point_form(priors))      # (num_obj, P)
    best_prior_idx = jnp.argmax(overlaps, axis=1)          # (num_obj,)
    best_truth_overlap = jnp.max(overlaps, axis=0)         # (P,)
    best_truth_idx = jnp.argmax(overlaps, axis=0)          # (P,)
    best_truth_overlap = best_truth_overlap.at[best_prior_idx].set(2.0)

    def body(j, bti):  # sequential last-writer-wins, matches the torch loop
        return bti.at[best_prior_idx[j]].set(j)
    best_truth_idx = jax.lax.fori_loop(0, truths.shape[0], body, best_truth_idx)

    matches = truths[best_truth_idx]                       # (P, 4)
    conf = labels[best_truth_idx].astype(jnp.int32) + 1
    conf = jnp.where(best_truth_overlap < threshold, 0, conf)
    loc = _encode(matches, priors, variances)
    return loc, conf


# ------------------------------- module --------------------------------------
class MultiBoxLoss:
    """JAX/Pallas port of SSD MultiBoxLoss.forward."""

    def __init__(self, cfg, neg_mining=True, bkg_label=0,
                 prior_for_matching=True, encode_target=False, use_gpu=True):
        self.num_classes = cfg['Data']['num_classes']
        self.threshold = cfg['Train']['match_thresh']
        self.negpos_ratio = cfg['Train']['neg_pos']
        self.neg_overlap = cfg['Train']['neg_thresh']
        self.do_neg_mining = neg_mining
        self.background_label = bkg_label
        self.variance = cfg['Prior_box']['variance']

    def forward(self, predictions, targets):
        loc_data, conf_data, priors = predictions
        num_priors = loc_data.shape[1]
        priors = priors[:num_priors, :]

        truths = targets[:, :, :4]
        labels = targets[:, :, 4]
        loc_t, conf_t = jax.vmap(
            lambda tr, lb: _match_one(self.threshold, tr, priors,
                                      self.variance, lb)
        )(truths, labels)

        return multibox_losses(loc_data, conf_data, loc_t, conf_t,
                               self.negpos_ratio)

    __call__ = forward


# --------------------------------- demo --------------------------------------
if __name__ == "__main__":
    cfg = {
        'Data': {'num_classes': 8},
        'Train': {'match_thresh': 0.5, 'neg_pos': 3, 'neg_thresh': 0.5},
        'Prior_box': {'variance': (0.1, 0.2)},
    }
    B, P, C, num_objs = 2, 512, cfg['Data']['num_classes'], 3

    key = jax.random.PRNGKey(0)
    k = jax.random.split(key, 7)
    loc_data = 0.1 * jax.random.normal(k[0], (B, P, 4), jnp.float32)
    conf_data = jax.random.normal(k[1], (B, P, C), jnp.float32)
    pc = jax.random.uniform(k[2], (P, 2), minval=0.05, maxval=0.95)
    pwh = jax.random.uniform(k[3], (P, 2), minval=0.10, maxval=0.50)
    priors = jnp.concatenate([pc, pwh], axis=1)                      # (P, 4)
    centers = jax.random.uniform(k[4], (B, num_objs, 2), minval=0.3, maxval=0.7)
    sizes = jax.random.uniform(k[5], (B, num_objs, 2), minval=0.15, maxval=0.40)
    labels = jax.random.randint(k[6], (B, num_objs), 0, C - 1).astype(jnp.float32)
    targets = jnp.concatenate(
        [centers - sizes / 2, centers + sizes / 2, labels[..., None]], axis=-1
    )                                                                # (B, num_objs, 5)

    criterion = MultiBoxLoss(cfg)
    loss_l, loss_c = criterion((loc_data, conf_data, priors), targets)
    loss_l, loss_c = jax.block_until_ready((loss_l, loss_c))
    assert bool(jnp.isfinite(loss_l)) and bool(jnp.isfinite(loss_c))
    print("KERNEL_OK")
</pallas_src>

<mosaic_0001>
module attributes {stable_mosaic.version = 11 : i64} {
  func.func @_per_prior_kernel(%arg0: i32, %arg1: memref<2x8x128xf32, #tpu.memory_space<vmem>>, %arg2: memref<2x4x128xf32, #tpu.memory_space<vmem>>, %arg3: memref<2x4x128xf32, #tpu.memory_space<vmem>>, %arg4: memref<2x128xi32, #tpu.memory_space<vmem>>, %arg5: memref<2x128xf32, #tpu.memory_space<vmem>>, %arg6: memref<2x128xf32, #tpu.memory_space<vmem>>, %arg7: memref<2x128xf32, #tpu.memory_space<vmem>>) attributes {dimension_semantics = [#tpu.dimension_semantics<parallel>], iteration_bounds = array<i64: 4>, scalar_prefetch = 0 : i64, scratch_operands = 0 : i64, tpu.core_type = #tpu.core_type<tc>, window_params = [{transform_indices = @transform_0, window_bounds = array<i64: 2, 8, 128>}, {transform_indices = @transform_1, window_bounds = array<i64: 2, 4, 128>}, {transform_indices = @transform_2, window_bounds = array<i64: 2, 4, 128>}, {transform_indices = @transform_3, window_bounds = array<i64: 2, 128>}, {transform_indices = @transform_4, window_bounds = array<i64: 2, 128>}, {transform_indices = @transform_5, window_bounds = array<i64: 2, 128>}, {transform_indices = @transform_6, window_bounds = array<i64: 2, 128>}]} {
    %c0 = arith.constant 0 : index
    %c0_0 = arith.constant 0 : index
    %0 = vector.load %arg4[%c0, %c0_0] : memref<2x128xi32, #tpu.memory_space<vmem>>, vector<2x128xi32>
    %c0_i32 = arith.constant 0 : i32
    %1 = vector.broadcast %c0_i32 : i32 to vector<2x128xi32>
    %2 = arith.cmpi sgt, %0, %1 : vector<2x128xi32>
    %c0_1 = arith.constant 0 : index
    %c0_2 = arith.constant 0 : index
    %c0_3 = arith.constant 0 : index
    %3 = vector.load %arg1[%c0_1, %c0_2, %c0_3] : memref<2x8x128xf32, #tpu.memory_space<vmem>>, vector<2x8x128xf32>
    %cst = arith.constant dense<0xFF800000> : vector<2x128xf32>
    %4 = vector.multi_reduction <maximumf>, %3, %cst [1] : vector<2x8x128xf32> to vector<2x128xf32>
    %5 = vector.shape_cast %4 : vector<2x128xf32> to vector<2x1x128xf32>
    %6 = vector.broadcast %5 : vector<2x1x128xf32> to vector<2x8x128xf32>
    %7 = arith.subf %3, %6 : vector<2x8x128xf32>
    %8 = math.exp %7 : vector<2x8x128xf32>
    %cst_4 = arith.constant dense<0.000000e+00> : vector<2x128xf32>
    %9 = vector.multi_reduction <add>, %8, %cst_4 [1] : vector<2x8x128xf32> to vector<2x128xf32>
    %cst_5 = arith.constant 0.000000e+00 : f32
    %10 = vector.broadcast %cst_5 : f32 to vector<2x128xf32>
    %c0_i32_6 = arith.constant 0 : i32
    %11 = vector.broadcast %c0_i32_6 : i32 to vector<2x128xi32>
    %12 = arith.cmpi eq, %0, %11 : vector<2x128xi32>
    %13 = vector.extract_strided_slice %3 {offsets = [0, 0, 0], sizes = [2, 1, 128], strides = [1, 1, 1]} : vector<2x8x128xf32> to vector<2x1x128xf32>
    %14 = vector.shape_cast %13 : vector<2x1x128xf32> to vector<2x128xf32>
    %15 = arith.select %12, %14, %10 : vector<2x128xi1>, vector<2x128xf32>
    %c1_i32 = arith.constant 1 : i32
    %16 = vector.broadcast %c1_i32 : i32 to vector<2x128xi32>
    %17 = arith.cmpi eq, %0, %16 : vector<2x128xi32>
    %18 = vector.extract_strided_slice %3 {offsets = [0, 1, 0], sizes = [2, 1, 128], strides = [1, 1, 1]} : vector<2x8x128xf32> to vector<2x1x128xf32>
    %19 = vector.shape_cast %18 : vector<2x1x128xf32> to vector<2x128xf32>
    %20 = arith.select %17, %19, %15 : vector<2x128xi1>, vector<2x128xf32>
    %c2_i32 = arith.constant 2 : i32
    %21 = vector.broadcast %c2_i32 : i32 to vector<2x128xi32>
    %22 = arith.cmpi eq, %0, %21 : vector<2x128xi32>
    %23 = vector.extract_strided_slice %3 {offsets = [0, 2, 0], sizes = [2, 1, 128], strides = [1, 1, 1]} : vector<2x8x128xf32> to vector<2x1x128xf32>
    %24 = vector.shape_cast %23 : vector<2x1x128xf32> to vector<2x128xf32>
    %25 = arith.select %22, %24, %20 : vector<2x128xi1>, vector<2x128xf32>
    %c3_i32 = arith.constant 3 : i32
    %26 = vector.broadcast %c3_i32 : i32 to vector<2x128xi32>
    %27 = arith.cmpi eq, %0, %26 : vector<2x128xi32>
    %28 = vector.extract_strided_slice %3 {offsets = [0, 3, 0], sizes = [2, 1, 128], strides = [1, 1, 1]} : vector<2x8x128xf32> to vector<2x1x128xf32>
    %29 = vector.shape_cast %28 : vector<2x1x128xf32> to vector<2x128xf32>
    %30 = arith.select %27, %29, %25 : vector<2x128xi1>, vector<2x128xf32>
    %c4_i32 = arith.constant 4 : i32
    %31 = vector.broadcast %c4_i32 : i32 to vector<2x128xi32>
    %32 = arith.cmpi eq, %0, %31 : vector<2x128xi32>
    %33 = vector.extract_strided_slice %3 {offsets = [0, 4, 0], sizes = [2, 1, 128], strides = [1, 1, 1]} : vector<2x8x128xf32> to vector<2x1x128xf32>
    %34 = vector.shape_cast %33 : vector<2x1x128xf32> to vector<2x128xf32>
    %35 = arith.select %32, %34, %30 : vector<2x128xi1>, vector<2x128xf32>
    %c5_i32 = arith.constant 5 : i32
    %36 = vector.broadcast %c5_i32 : i32 to vector<2x128xi32>
    %37 = arith.cmpi eq, %0, %36 : vector<2x128xi32>
    %38 = vector.extract_strided_slice %3 {offsets = [0, 5, 0], sizes = [2, 1, 128], strides = [1, 1, 1]} : vector<2x8x128xf32> to vector<2x1x128xf32>
    %39 = vector.shape_cast %38 : vector<2x1x128xf32> to vector<2x128xf32>
    %40 = arith.select %37, %39, %35 : vector<2x128xi1>, vector<2x128xf32>
    %c6_i32 = arith.constant 6 : i32
    %41 = vector.broadcast %c6_i32 : i32 to vector<2x128xi32>
    %42 = arith.cmpi eq, %0, %41 : vector<2x128xi32>
    %43 = vector.extract_strided_slice %3 {offsets = [0, 6, 0], sizes = [2, 1, 128], strides = [1, 1, 1]} : vector<2x8x128xf32> to vector<2x1x128xf32>
    %44 = vector.shape_cast %43 : vector<2x1x128xf32> to vector<2x128xf32>
    %45 = arith.select %42, %44, %40 : vector<2x128xi1>, vector<2x128xf32>
    %c7_i32 = arith.constant 7 : i32
    %46 = vector.broadcast %c7_i32 : i32 to vector<2x128xi32>
    %47 = arith.cmpi eq, %0, %46 : vector<2x128xi32>
    %48 = vector.extract_strided_slice %3 {offsets = [0, 7, 0], sizes = [2, 1, 128], strides = [1, 1, 1]} : vector<2x8x128xf32> to vector<2x1x128xf32>
    %49 = vector.shape_cast %48 : vector<2x1x128xf32> to vector<2x128xf32>
    %50 = arith.select %47, %49, %45 : vector<2x128xi1>, vector<2x128xf32>
    %51 = math.log %9 : vector<2x128xf32>
    %52 = arith.addf %51, %4 : vector<2x128xf32>
    %53 = arith.subf %52, %50 : vector<2x128xf32>
    %c0_7 = arith.constant 0 : index
    %c0_8 = arith.constant 0 : index
    %c0_9 = arith.constant 0 : index
    %54 = vector.load %arg2[%c0_7, %c0_8, %c0_9] : memref<2x4x128xf32, #tpu.memory_space<vmem>>, vector<2x4x128xf32>
    %c0_10 = arith.constant 0 : index
    %c0_11 = arith.constant 0 : index
    %c0_12 = arith.constant 0 : index
    %55 = vector.load %arg3[%c0_10, %c0_11, %c0_12] : memref<2x4x128xf32, #tpu.memory_space<vmem>>, vector<2x4x128xf32>
    %56 = arith.subf %54, %55 : vector<2x4x128xf32>
    %57 = math.absf %56 : vector<2x4x128xf32>
    %cst_13 = arith.constant 1.000000e+00 : f32
    %58 = vector.broadcast %cst_13 : f32 to vector<2x4x128xf32>
    %59 = arith.cmpf olt, %57, %58 : vector<2x4x128xf32>
    %cst_14 = arith.constant 5.000000e-01 : f32
    %60 = vector.broadcast %cst_14 : f32 to vector<2x4x128xf32>
    %61 = arith.mulf %60, %56 : vector<2x4x128xf32>
    %62 = arith.mulf %61, %56 : vector<2x4x128xf32>
    %cst_15 = arith.constant 5.000000e-01 : f32
    %63 = vector.broadcast %cst_15 : f32 to vector<2x4x128xf32>
    %64 = arith.subf %57, %63 : vector<2x4x128xf32>
    %65 = arith.select %59, %62, %64 : vector<2x4x128xi1>, vector<2x4x128xf32>
    %cst_16 = arith.constant dense<0.000000e+00> : vector<2x128xf32>
    %66 = vector.multi_reduction <add>, %65, %cst_16 [1] : vector<2x4x128xf32> to vector<2x128xf32>
    %67 = tpu.iota {dimensions = array<i32: 1>} : vector<2x128xi32>
    %c128_i32 = arith.constant 128 : i32
    %68 = arith.muli %arg0, %c128_i32 : i32
    %69 = vector.broadcast %68 : i32 to vector<2x128xi32>
    %70 = arith.addi %67, %69 : vector<2x128xi32>
    %c512_i32 = arith.constant 512 : i32
    %71 = vector.broadcast %c512_i32 : i32 to vector<2x128xi32>
    %72 = arith.cmpi slt, %70, %71 : vector<2x128xi32>
    %cst_17 = arith.constant 0.000000e+00 : f32
    %73 = vector.broadcast %cst_17 : f32 to vector<2x128xf32>
    %74 = arith.select %2, %66, %73 : vector<2x128xi1>, vector<2x128xf32>
    %c0_18 = arith.constant 0 : index
    %c0_19 = arith.constant 0 : index
    %75 = vector.load %arg7[%c0_18, %c0_19] : memref<2x128xf32, #tpu.memory_space<vmem>>, vector<2x128xf32>
    tpu.vector_store %arg7[%c0_18, %c0_19], %74 {strides = array<i32>} : memref<2x128xf32, #tpu.memory_space<vmem>>, vector<2x128xf32>,
    %cst_20 = arith.constant 0.000000e+00 : f32
    %76 = vector.broadcast %cst_20 : f32 to vector<2x128xf32>
    %77 = arith.select %2, %53, %76 : vector<2x128xi1>, vector<2x128xf32>
    %c0_21 = arith.constant 0 : index
    %c0_22 = arith.constant 0 : index
    %78 = vector.load %arg6[%c0_21, %c0_22] : memref<2x128xf32, #tpu.memory_space<vmem>>, vector<2x128xf32>
    tpu.vector_store %arg6[%c0_21, %c0_22], %77 {strides = array<i32>} : memref<2x128xf32, #tpu.memory_space<vmem>>, vector<2x128xf32>,
    %cst_23 = arith.constant dense<true> : vector<2x128xi1>
    %79 = arith.xori %2, %cst_23 : vector<2x128xi1>
    %80 = arith.andi %72, %79 : vector<2x128xi1>
    %cst_24 = arith.constant 0.000000e+00 : f32
    %81 = vector.broadcast %cst_24 : f32 to vector<2x128xf32>
    %82 = arith.select %80, %53, %81 : vector<2x128xi1>, vector<2x128xf32>
    %c0_25 = arith.constant 0 : index
    %c0_26 = arith.constant 0 : index
    %83 = vector.load %arg5[%c0_25, %c0_26] : memref<2x128xf32, #tpu.memory_space<vmem>>, vector<2x128xf32>
    tpu.vector_store %arg5[%c0_25, %c0_26], %82 {strides = array<i32>} : memref<2x128xf32, #tpu.memory_space<vmem>>, vector<2x128xf32>,
    return
  }
  func.func @transform_0(%arg0: i32) -> (i32, i32, i32) {
    %c0_i32 = arith.constant 0 : i32
    %c0_i32_0 = arith.constant 0 : i32
    %c0_i32_1 = arith.constant 0 : i32
    return %c0_i32, %c0_i32_0, %arg0 : i32, i32, i32
  }
  func.func @transform_1(%arg0: i32) -> (i32, i32, i32) {
    %c0_i32 = arith.constant 0 : i32
    %c0_i32_0 = arith.constant 0 : i32
    %c0_i32_1 = arith.constant 0 : i32
    return %c0_i32, %c0_i32_0, %arg0 : i32, i32, i32
  }
  func.func @transform_2(%arg0: i32) -> (i32, i32, i32) {
    %c0_i32 = arith.constant 0 : i32
    %c0_i32_0 = arith.constant 0 : i32
    %c0_i32_1 = arith.constant 0 : i32
    return %c0_i32, %c0_i32_0, %arg0 : i32, i32, i32
  }
  func.func @transform_3(%arg0: i32) -> (i32, i32) {
    %c0_i32 = arith.constant 0 : i32
    %c0_i32_0 = arith.constant 0 : i32
    return %c0_i32, %arg0 : i32, i32
  }
  func.func @transform_4(%arg0: i32) -> (i32, i32) {
    %c0_i32 = arith.constant 0 : i32
    %c0_i32_0 = arith.constant 0 : i32
    return %c0_i32, %arg0 : i32, i32
  }
  func.func @transform_5(%arg0: i32) -> (i32, i32) {
    %c0_i32 = arith.constant 0 : i32
    %c0_i32_0 = arith.constant 0 : i32
    return %c0_i32, %arg0 : i32, i32
  }
  func.func @transform_6(%arg0: i32) -> (i32, i32) {
    %c0_i32 = arith.constant 0 : i32
    %c0_i32_0 = arith.constant 0 : i32
    return %c0_i32, %arg0 : i32, i32
  }
}

</mosaic_0001>

<bundles_post_ra>
// kernel: tpu_custom_call.1
= control target key start
LH: loop header
LB: loop body
LE: loop exit
PB: predicated region body
PF: predicated region fallthrough
CT: control target
= control target key end

     0   :  { %s1624_s0 = inlined_call_operand.hbm [shape: f32[2,8,512], index: 0, kind: input, shape index: {}]   ;;  %s1625_s1 = inlined_call_operand.hbm [shape: f32[2,4,512], index: 1, kind: input, shape index: {}]   ;;  %s1626_s2 = inlined_call_operand.hbm [shape: f32[2,4,512], index: 2, kind: input, shape index: {}]   ;;  %s1627_s3 = inlined_call_operand.hbm [shape: s32[2,512], index: 3, kind: input, shape index: {}]   ;;  %s1628_s4 = inlined_call_operand.hbm [shape: f32[2,512], index: 4, kind: output, shape index: {0}]   ;;  %s1629_s5 = inlined_call_operand.hbm [shape: f32[2,512], index: 5, kind: output, shape index: {1}]   ;;  %s1630_s6 = inlined_call_operand.hbm [shape: f32[2,512], index: 6, kind: output, shape index: {2}]  }
   0x1   :  { %1643 = sst [smem:[#allocation23_spill]] %s1625_s1 }
   0x2   :  { %12 = vsyncpa [#allocation3], 0 }
   0x3   :  { %14 = vsyncpa [#allocation3 + $0x1], 0 }
   0x4   :  { %15 = vsyncpa [#allocation6], 0 }
   0x5   :  { %17 = vsyncpa [#allocation6 + $0x1], 0 }
   0x6   :  { %18 = vsyncpa [#allocation9], 0 }
   0x7   :  { %20 = vsyncpa [#allocation9 + $0x1], 0 }
   0x8   :  { %21 = vsyncpa [#allocation4], 0 }
   0x9   :  { %23 = vsyncpa [#allocation4 + $0x1], 0 }
   0xa   :  { %24 = vsyncpa [#allocation12], 0 }
   0xb   :  { %26 = vsyncpa [#allocation12 + $0x1], 0  ;;  %s1204_s21 = smov 0   ;;  %s1206_s22 = smov 0  }
   0xc   :  { %s1208_s23 = smov 0   ;;  %s1210_s24 = smov 0  }
   0xd LB: > { %1644 = sst [smem:[#allocation19_spill]] %s1149_s23  ;;  %s1225_s25 = sadd.s32 4294967295, %s1153_s24   ;;  %s1153_s24 = sphi %s1210_s24, %s1666_s24   ;;  %s1149_s23 = sphi %s1208_s23, %s1668_s23   ;;  %s1145_s22 = sphi %s1206_s22, %s1670_s22   ;;  %s1141_s21 = sphi %s1204_s21, %s1669_s21  }
   0xe   : > { %s1631_s26 = sadd.s32 4294967294, %s1153_s24   ;;  %s1229_s27 = sadd.s32 1, %s1153_s24  }
   0xf   : > { %1645 = sst [smem:[#allocation20_spill]] %s1229_s27  ;;  %s39_s28 = sadd.s32 1, %s1149_s23 }
  0x10   : > { %s36_s29 = ssub.s32 %s1153_s24, %s1229_s27  ;;  %p46_p0 = scmp.ne.s32.totalorder %s1149_s23, %s1145_s22 }
  0x11   : > { %p37_p1 = scmp.eq.s32.totalorder %s36_s29, 0  ;;  %p47_p2 = scmp.eq.s32.totalorder %s1153_s24, 0 }
  0x12   : > { %p52_p3 = scmp.ne.s32.totalorder %s1145_s22, %s1141_s21  ;;  %p53_p4 = scmp.eq.s32.totalorder %s1225_s25, 0 }
  0x13   : > { %s1241_s30 = scalar_select %p37_p1, %s1149_s23, %s39_s28  }
  0x14   : > { %p48_p5 = por %p47_p2, %p46_p0  ;;  %p1243_p6 = por %p53_p4, %p52_p3 }
  0x15   : > { %1646 = sst [smem:[#allocation21_spill]] %s1241_s30  ;;  %p154_p7 = scmp.eq.s32.totalorder %s1225_s25, 3 }
  0x16   : > { %s1647_s7 = scalar_select %p1243_p6, 1, 0 }
  0x17   : > { %p160_p8 = scmp.eq.s32.totalorder %s1631_s26, 3  ;;  %p864_p9 = scmp.lt.s32.totalorder %s1153_s24, 4 }
  0x18   : > { %p1251_p10 = por %p154_p7, %p46_p0  ;;  %s1260_s10 = sand.u32 1, %s1149_s23  }
  0x19   : > { %p1255_p11 = por %p160_p8, %p52_p3  ;;  %p1262_p12 = pnand %p864_p9, %p48_p5 }
  0x1a   : > { %s1648_s8 = scalar_select %p1251_p10, 1, 0 }
  0x1b   : > { %s1649_s9 = scalar_select %p1255_p11, 1, 0 }
  0x1c   : > { %s252_s12 = sand.u32 1, %s1153_s24   ;;  %s1632_s13 = sshll.u32 %s1260_s10, 3 }
  0x1d   : > { %1650 = sst [smem:[#allocation22_spill]] %s1649_s9  ;;  %s1633_s14 = sshll.u32 %s1153_s24, 6 }
  0x1e   : > { %s1652_s1 = sld [smem:[#allocation23_spill]]  ;;  %s256_s18 = scalar_lea.vmem [#allocation5], %s1632_s13 }
  0x1f   : > { %s262_s19 = sshll.u32 %s256_s18, 4  ;;  %s1280_s20 = scalar_lea.sflag [#allocation6], %s252_s12  ;;  %s1278_s19 = int_to_ptr.vmem [resolvable:$true] %s262_s19 }
  0x20   : > { %p1286_p0 = pneg %p1262_p12 }
  0x24   : > { %s1274_s17 = scalar_lea.hbm %s1652_s1, %s1633_s14  ;;  %s918_s26 = scalar_lea.hbm %s1652_s1, 512 }
  0x25   : > { %s913_s28 = scalar_lea.hbm %s1274_s17, 128  ;;  %p919_p3 = scmp.lt.s32.totalorder %s1274_s17, %s1652_s1 }
  0x26   : > { %p914_p13 = scmp.ne.s32.totalorder %s1274_s17, %s913_s28  ;;  %p920_p4 = scmp.lt.s32.totalorder %s918_s26, %s913_s28 }
  0x28   : > { %p916_p1 = pnand %p1286_p0, %p914_p13  ;;  %p921_p5 = por %p920_p4, %p919_p3 }
  0x2a   : > { %p917_p2 = pneg %p916_p1 }
  0x2c   : > { %p922_p7 = pnand %p921_p5, %p917_p2 }
  0x2e   : > { %925 = shalt.err (!%p922_p7)
}
  0x2f   : > { %s926_s12 = scalar_lea.vmem %s1278_s19, 128  ;;  %s1155_s14 = smov [#allocation5]  }
  0x30   : > { %p927_p8 = scmp.ne.s32.totalorder %s1278_s19, %s926_s12  ;;  %s931_s15 = sshll.u32 %s1155_s14, 4  ;;  %s932_s15 = int_to_ptr.vmem [resolvable:$false] %s931_s15 }
  0x31   : > { %s933_s16 = scalar_lea.vmem %s932_s15, 256  ;;  %p934_p1 = scmp.lt.s32.totalorder %s1278_s19, %s932_s15 }
  0x32   : > { %p929_p9 = pnand %p927_p8, %p1286_p0  ;;  %p935_p11 = scmp.lt.s32.totalorder %s933_s16, %s926_s12 }
  0x34   : > { %p930_p13 = pneg %p929_p9  ;;  %p936_p10 = por %p935_p11, %p934_p1 }
  0x36   : > { %p937_p6 = pnand %p936_p10, %p930_p13 }
  0x38   : > { %940 = shalt.err (!%p937_p6)
}
  0x39   : > { %s1639_s26 = smov 256   ;;  %s1640_s13 = smov 64  }
  0x3a   : > { %s1641_s14 = smov 4   ;;  %s1654_s28 = sshll.u32 %s1153_s24, 6 }
  0x3b   : > { %847 = dma.hbm_to_vmem [thread:$0]  (!%p1262_p12), %s1274_s17, 128, %s1278_s19, %s1280_s20, %s1639_s26, %s1640_s13, %s1641_s14  }
  0x3c   : > { %s1317_s15 = scalar_lea.hbm %s1626_s2, %s1654_s28  ;;  %s1655_s16 = sshll.u32 %s1260_s10, 3 }
  0x3d   : > { %s276_s1 = scalar_lea.vmem [#allocation7], %s1655_s16  ;;  %p808_p6 = scmp.ge.s32.totalorder %s1153_s24, 1 }
  0x3e   : > { %s282_s30 = sshll.u32 %s276_s1, 4  ;;  %p308_p10 = scmp.lt.s32.totalorder %s1153_s24, 5  ;;  %s1322_s30 = int_to_ptr.vmem [resolvable:$true] %s282_s30 }
  0x3f   : > { %s800_s23 = sshll.u32 %s1260_s10, 4  ;;  %s801_s17 = sshll.u32 %s1153_s24, 7 }
  0x40   : > { %p1326_p11 = pnand %p808_p6, %p308_p10  ;;  %s236_s19 = scalar_lea.vmem [#allocation2], %s800_s23 }
  0x41   : > { %s242_s26 = sshll.u32 %s236_s19, 4  ;;  %s1334_s28 = scalar_lea.hbm %s1624_s0, %s801_s17  ;;  %s1336_s26 = int_to_ptr.vmem [resolvable:$true] %s242_s26 }
  0x42   : > { %s1656_s27 = scalar_select %p1326_p11, 1, 0 }
  0x43   : > { %s233_s1 = scalar_lea.sflag [#allocation3], %s1260_s10  ;;  %s941_s12 = scalar_lea.hbm %s1334_s28, 256 }
  0x44   : > { %p942_p2 = scmp.ne.s32.totalorder %s1334_s28, %s941_s12  ;;  %s946_s23 = scalar_lea.hbm %s1624_s0, 1024 }
  0x45   : > { %p947_p5 = scmp.lt.s32.totalorder %s1334_s28, %s1624_s0  ;;  %p948_p7 = scmp.lt.s32.totalorder %s946_s23, %s941_s12 }
  0x46   : > { %p944_p3 = pnand %p942_p2, %p1286_p0 }
  0x47   : > { %p949_p8 = por %p948_p7, %p947_p5 }
  0x48   : > { %p945_p4 = pneg %p944_p3 }
  0x4a   : > { %p950_p9 = pnand %p949_p8, %p945_p4 }
  0x4c   : > { %953 = shalt.err (!%p950_p9)
}
  0x4d   : > { %s954_s13 = scalar_lea.vmem %s1336_s26, 256  ;;  %s1159_s17 = smov [#allocation2]  }
  0x4e   : > { %p955_p13 = scmp.ne.s32.totalorder %s1336_s26, %s954_s13  ;;  %s959_s14 = sshll.u32 %s1159_s17, 4  ;;  %s960_s14 = int_to_ptr.vmem [resolvable:$false] %s959_s14 }
  0x4f   : > { %s961_s18 = scalar_lea.vmem %s960_s14, 512  ;;  %p962_p10 = scmp.lt.s32.totalorder %s1336_s26, %s960_s14 }
  0x50   : > { %p957_p1 = pnand %p955_p13, %p1286_p0  ;;  %p963_p2 = scmp.lt.s32.totalorder %s961_s18, %s954_s13 }
  0x52   : > { %p958_p6 = pneg %p957_p1  ;;  %p964_p3 = por %p963_p2, %p962_p10 }
  0x54   : > { %p965_p11 = pnand %p964_p3, %p958_p6 }
  0x56   : > { %968 = shalt.err (!%p965_p11)
}
  0x57   : > { %s1160_s9 = smov 512   ;;  %s1161_s12 = smov 128  }
  0x58   : > { %s1162_s16 = smov 8   ;;  %s969_s23 = scalar_lea.hbm %s1317_s15, 128 }
  0x59   : > { %844 = dma.hbm_to_vmem [thread:$0]  (!%p1262_p12), %s1334_s28, 256, %s1336_s26, %s233_s1, %s1160_s9, %s1161_s12, %s1162_s16  }
  0x5a   : > { %p970_p4 = scmp.ne.s32.totalorder %s1317_s15, %s969_s23  ;;  %s974_s17 = scalar_lea.hbm %s1626_s2, 512 }
  0x5b   : > { %p975_p11 = scmp.lt.s32.totalorder %s1317_s15, %s1626_s2  ;;  %p976_p8 = scmp.lt.s32.totalorder %s974_s17, %s969_s23 }
  0x5c   : > { %p972_p5 = pnand %p970_p4, %p1286_p0 }
  0x5d   : > { %p977_p9 = por %p976_p8, %p975_p11 }
  0x5e   : > { %p973_p7 = pneg %p972_p5 }
  0x60   : > { %p978_p13 = pnand %p977_p9, %p973_p7 }
  0x62   : > { %981 = shalt.err (!%p978_p13)
}
  0x63   : > { %s982_s26 = scalar_lea.vmem %s1322_s30, 128  ;;  %s1163_s28 = smov [#allocation7]  }
  0x64   : > { %p983_p1 = scmp.ne.s32.totalorder %s1322_s30, %s982_s26  ;;  %s987_s1 = sshll.u32 %s1163_s28, 4  ;;  %s988_s1 = int_to_ptr.vmem [resolvable:$false] %s987_s1 }
  0x65   : > { %s989_s9 = scalar_lea.vmem %s988_s1, 256  ;;  %p990_p2 = scmp.lt.s32.totalorder %s1322_s30, %s988_s1 }
  0x66   : > { %p985_p6 = pnand %p983_p1, %p1286_p0  ;;  %p991_p3 = scmp.lt.s32.totalorder %s989_s9, %s982_s26 }
  0x68   : > { %p986_p10 = pneg %p985_p6  ;;  %p992_p4 = por %p991_p3, %p990_p2 }
  0x6a   : > { %p993_p5 = pnand %p992_p4, %p986_p10 }
  0x6c   : > { %996 = shalt.err (!%p993_p5)
}
  0x6d   : > { %s1657_s12 = smov 4   ;;  %s1658_s16 = smov 64  }
  0x6e   : > { %s1659_s23 = smov 256   ;;  %s806_s19 = sshll.u32 %s1260_s10, 1 }
  0x6f   : > { %850 = dma.hbm_to_vmem [thread:$0]  (!%p1262_p12), %s1317_s15, 128, %s1322_s30, %s1280_s20, %s1659_s23, %s1658_s16, %s1657_s12  }
  0x70   : > { %s807_s13 = sshll.u32 %s1153_s24, 5  ;;  %s296_s26 = scalar_lea.vmem [#allocation8], %s806_s19 }
  0x71   : > { %s1390_s18 = scalar_lea.hbm %s1627_s3, %s807_s13  ;;  %s303_s28 = sshll.u32 %s296_s26, 4  ;;  %s304_s28 = int_to_ptr.vmem [resolvable:$true] %s303_s28 }
  0x72   : > { %s293_s1 = scalar_lea.sflag [#allocation9], %s1260_s10  ;;  %s997_s9 = scalar_lea.hbm %s1390_s18, 32 }
  0x73   : > { %p998_p7 = scmp.ne.s32.totalorder %s1390_s18, %s997_s9  ;;  %s1002_s15 = scalar_lea.hbm %s1627_s3, 128 }
  0x74   : > { %p1003_p9 = scmp.lt.s32.totalorder %s1390_s18, %s1627_s3  ;;  %p1004_p13 = scmp.lt.s32.totalorder %s1002_s15, %s997_s9 }
  0x75   : > { %p1000_p11 = pnand %p998_p7, %p1286_p0 }
  0x76   : > { %p1005_p1 = por %p1004_p13, %p1003_p9 }
  0x77   : > { %p1001_p8 = pneg %p1000_p11 }
  0x79   : > { %p1006_p6 = pnand %p1005_p1, %p1001_p8 }
  0x7b   : > { %1009 = shalt.err (!%p1006_p6)
}
  0x7c   : > { %s1010_s23 = scalar_lea.vmem %s304_s28, 32  ;;  %s1164_s10 = smov [#allocation8]  }
  0x7d   : > { %p1011_p10 = scmp.ne.s32.totalorder %s304_s28, %s1010_s23  ;;  %s1015_s19 = sshll.u32 %s1164_s10, 4  ;;  %s1016_s19 = int_to_ptr.vmem [resolvable:$false] %s1015_s19 }
  0x7e   : > { %s1017_s13 = scalar_lea.vmem %s1016_s19, 64  ;;  %p1018_p4 = scmp.lt.s32.totalorder %s304_s28, %s1016_s19 }
  0x7f   : > { %p1013_p2 = pnand %p1011_p10, %p1286_p0  ;;  %p1019_p5 = scmp.lt.s32.totalorder %s1017_s13, %s1010_s23 }
  0x81   : > { %p1014_p3 = pneg %p1013_p2  ;;  %p1020_p7 = por %p1019_p5, %p1018_p4 }
  0x83   : > { %p1021_p11 = pnand %p1020_p7, %p1014_p3 }
  0x85   : > { %1024 = shalt.err (!%p1021_p11)
}
  0x86   : > { %853 = dma.hbm_to_vmem [thread:$0]  (!%p1262_p12), %s1390_s18, 32, %s304_s28, %s293_s1  }
  0x87   : > { %p1660_p8 = scmp.ne.s32.totalorder %s1656_s27, 0 }
  0x88   : > { %s1412_s29 = sand.u32 (!%p1660_p8), 1, %s1145_s22   ;;  %p1661_p0 = scmp.ne.s32.totalorder (!%p1660_p8), %s1647_s7, 0 }
  0x89   : > { %312 = sbr.rel (%p1660_p8) target bundleno = 279 (0x117), region = 36  ;;  %s809_s17 = sshll.u32 (!%p1660_p8), %s1412_s29, 4 }
  0x8a   : > { %s315_s14 = scalar_lea.sflag (!%p1660_p8), [#allocation3], %s1412_s29  ;;  %s318_s26 = scalar_lea.vmem (!%p1660_p8), [#allocation2], %s809_s17 }
  0x8e   : > { %1120 = dma.done.wait (%p1661_p0), %s315_s14, 256  }
  0x8f   : > { %1122 = vsyncadd (%p1661_p0), %s315_s14, 4294967040  ;;  %s323_s27 = sand.u32 1, %s1225_s25   ;;  %s810_s11 = sshll.u32 %s1412_s29, 3 }
  0x90   : > { %s324_s18 = scalar_lea.sflag [#allocation6], %s323_s27  ;;  %s327_s28 = scalar_lea.vmem [#allocation5], %s810_s11 }
  0x91   : > { %1124 = dma.done.wait (%p1661_p0), %s324_s18, 256  }
  0x92   : > { %1126 = vsyncadd (%p1661_p0), %s324_s18, 4294967040  ;;  %s1429_s1 = sshll.u32 %s1412_s29, 1  ;;  %s336_s9 = scalar_lea.vmem [#allocation7], %s810_s11 }
  0x93   : > { %s342_s30 = scalar_lea.sflag [#allocation9], %s1412_s29  ;;  %s345_s20 = scalar_lea.vmem [#allocation8], %s1429_s1 }
  0x94   : > { %1128 = dma.done.wait (%p1661_p0), %s342_s30, 32  }
  0x95   : > { %1130 = vsyncadd (%p1661_p0), %s342_s30, 4294967264  ;;  %v1437_v0 = vld [vmem:[%s318_s26] sm:$0xff]  ;;  %v1439_v1 = vld [vmem:[%s318_s26 + $0x8] sm:$0xff]  ;;  %vm512_vm2 = vcmask 1043456   ;;  %vm437_vm3 = vcmask 1041409   ;;  %s398_s7 = scalar_lea.vmem [#allocation13], %s1429_s1 }
  0x96   : > { %v403_v2 = vrot.slane %v1437_v0, 4  ;;  %v409_v3 = vrot.slane %v1439_v1, 4  ;;  %v494_v10 = vld [vmem:[%s327_s28] sm:$0xf]  ;;  %v495_v11 = vld [vmem:[%s327_s28 + $0x4] sm:$0xf] }
  0x97   : > { %v496_v14 = vld [vmem:[%s336_s9] sm:$0xf]  ;;  %v497_v15 = vld [vmem:[%s336_s9 + $0x4] sm:$0xf]  ;;  %v1459_v42 = vld [vmem:[%s345_s20] sm:$0x3] }
  0x98   : > { %v404_v4 = vmax.f32 %v1437_v0, %v403_v2  ;;  %v410_v5 = vmax.f32 %v1439_v1, %v409_v3  ;;  %v498_v18 = vsub.f32 %v494_v10, %v496_v14  ;;  %v499_v19 = vsub.f32 %v495_v11, %v497_v15  ;;  %s818_s15 = sshll.u32 %s1225_s25, 7  ;;  %s391_s12 = scalar_lea.vmem [#allocation11], %s1429_s1 }
  0x99   : > { %v436_v43 = vrot.slane %v1439_v1, 7  ;;  %vm433_vm4 = vcmp.eq.s32.totalorder %v1459_v42, 0  ;;  %v442_v49 = vrot.slane %v1437_v0, 1  ;;  %vm400_vm5 = vcmp.gt.s32.totalorder %v1459_v42, 0  ;;  %s587_s16 = sshll.u32 %s391_s12, 4  ;;  %s384_s23 = scalar_lea.vmem [#allocation10], %s1429_s1  ;;  %s1514_s16 = int_to_ptr.vmem [resolvable:$true] %s587_s16 }
  0x9a   : > { %v405_v6 = vrot.slane %v404_v4, 2  ;;  %v411_v7 = vrot.slane %v410_v5, 2  ;;  %v500_v22 = vand.u32 2147483647, %v498_v18  ;;  %v501_v23 = vand.u32 2147483647, %v499_v19 }
  0x9b   : > { %v504_v24 = vmul.f32 0.5, %v498_v18  ;;  %v505_v27 = vmul.f32 0.5, %v499_v19  ;;  %v438_v52 = vsel %vm437_vm3, %v436_v43, %v1437_v0  ;;  %vm441_vm6 = vcmp.eq.s32.totalorder %v1459_v42, 1  ;;  %s574_s10 = sshll.u32 %s384_s23, 4  ;;  %s822_s19 = sshll.u32 %s1225_s25, 5  ;;  %s1517_s10 = int_to_ptr.vmem [resolvable:$true] %s574_s10 }
  0x9c   : > { %v406_v8 = vmax.f32 %v404_v4, %v405_v6  ;;  %v412_v9 = vmax.f32 %v410_v5, %v411_v7  ;;  %vm502_vm0 = vcmp.lt.f32.partialorder %v500_v22, 1.0  ;;  %vm503_vm1 = vcmp.lt.f32.partialorder %v501_v23, 1.0  ;;  %s600_s13 = sshll.u32 %s398_s7, 4  ;;  %s1522_s26 = scalar_lea.hbm %s1629_s5, %s822_s19  ;;  %s1531_s13 = int_to_ptr.vmem [resolvable:$true] %s600_s13 }
  0x9d   : > { %v506_v28 = vmul.f32 %v504_v24, %v498_v18  ;;  %v507_v29 = vmul.f32 %v505_v27, %v499_v19  ;;  %v816_v30 = vadd.f32 -0.5, %v500_v22  ;;  %v817_v31 = vadd.f32 -0.5, %v501_v23  ;;  %s1529_s28 = scalar_lea.hbm %s1628_s4, %s822_s19  ;;  %s1536_s30 = scalar_lea.hbm %s1630_s6, %s822_s19 }
  0x9e   : > { %v407_v12 = vrot.slane %v406_v8, 1  ;;  %v413_v13 = vrot.slane %v412_v9, 1  ;;  %v447_v57 = vrot.slane %v1437_v0, 2  ;;  %v448_v58 = vrot.slane %v1439_v1, 1  ;;  %s1540_s20 = scalar_lea.sflag [#allocation12], %s323_s27  ;;  %p1662_p9 = scmp.ne.s32.totalorder %s1648_s8, 0 }
  0x9f   : > { %v510_v32 = vsel %vm502_vm0, %v506_v28, %v816_v30  ;;  %v511_v33 = vsel %vm503_vm1, %v507_v29, %v817_v31  ;;  %v440_v61 = vsel %vm433_vm4, %v438_v52, 0.0  ;;  %v443_v62 = vsel %vm437_vm3, %v1439_v1, %v442_v49 }
  0xa0   : > { %v1449_v16 = vmax.f32 %v406_v8, %v407_v12  ;;  %v1451_v17 = vmax.f32 %v412_v9, %v413_v13  ;;  %v513_v34 = vsel %vm512_vm2, %v510_v32, 0.0  ;;  %v520_v35 = vsel %vm512_vm2, %v511_v33, 0.0 }
  0xa1   : > { %v514_v36 = vrot.slane %v513_v34, 4  ;;  %v521_v37 = vrot.slane %v520_v35, 4  ;;  %v453_v6 = vrot.slane %v1437_v0, 3  ;;  %v454_v7 = vrot.slane %v1439_v1, 2 }
  0xa2   : > { %v415_v20 = vsub.f32 %v1437_v0, %v1449_v16  ;;  %v416_v21 = vsub.f32 %v1439_v1, %v1451_v17  ;;  %v445_v9 = vsel %vm441_vm6, %v443_v62, %v440_v61  ;;  %vm446_vm7 = vcmp.eq.s32.totalorder %v1459_v42, 2 }
  0xa3   : > { %v515_v38 = vadd.f32 %v514_v36, %v513_v34  ;;  %v522_v39 = vadd.f32 %v521_v37, %v520_v35  ;;  %v449_v10 = vsel %vm437_vm3, %v448_v58, %v447_v57  ;;  %v460_v13 = vrot.slane %v1439_v1, 3 }
  0xa4   : > { %v417_v25 = vmul.f32 1.442695, %v415_v20  ;;  %v419_v26 = vmul.f32 1.442695, %v416_v21  ;;  %v451_v15 = vsel %vm446_vm7, %v449_v10, %v445_v9  ;;  %vm452_vm8 = vcmp.eq.s32.totalorder %v1459_v42, 3 }
  0xa5   : > { %v516_v40 = vrot.slane %v515_v38, 2  ;;  %v523_v41 = vrot.slane %v522_v39, 2  ;;  %v455_v18 = vsel %vm437_vm3, %v454_v7, %v453_v6  ;;  %v465_v21 = vrot.slane %v1437_v0, 5 }
  0xa6   : > { %905 = vpow2.f32 %v417_v25  ;;  %v457_v22 = vsel %vm452_vm8, %v455_v18, %v451_v15  ;;  %vm458_vm9 = vcmp.eq.s32.totalorder %v1459_v42, 4  ;;  %v461_v23 = vsel %vm437_vm3, %v460_v13, %v403_v2 }
  0xa7   : > { %907 = vpow2.f32 %v419_v26  ;;  %v517_v44 = vadd.f32 %v516_v40, %v515_v38  ;;  %v524_v45 = vadd.f32 %v523_v41, %v522_v39  ;;  %v471_v24 = vrot.slane %v1437_v0, 6 }
  0xa8   : > { %v472_v25 = vrot.slane %v1439_v1, 5  ;;  %v463_v26 = vsel %vm458_vm9, %v461_v23, %v457_v22  ;;  %vm464_vm10 = vcmp.eq.s32.totalorder %v1459_v42, 5  ;;  %v467_v27 = vsel %vm437_vm3, %v409_v3, %v465_v21 }
  0xa9   : > { %v518_v46 = vrot.slane %v517_v44, 1  ;;  %v525_v47 = vrot.slane %v524_v45, 1  ;;  %v477_v28 = vrot.slane %v1437_v0, 7  ;;  %v478_v29 = vrot.slane %v1439_v1, 6 }
  0xaa   : > { %v469_v30 = vsel %vm464_vm10, %v467_v27, %v463_v26  ;;  %vm470_vm11 = vcmp.eq.s32.totalorder %v1459_v42, 6  ;;  %v473_v2 = vsel %vm437_vm3, %v472_v25, %v471_v24  ;;  %v527_v31 = vlaneseq }
  0xab   : > { %v519_v53 = vadd.f32 %v518_v46, %v517_v44  ;;  %v526_v54 = vadd.f32 %v525_v47, %v524_v45  ;;  %v475_v32 = vsel %vm470_vm11, %v473_v2, %v469_v30  ;;  %vm476_vm12 = vcmp.eq.s32.totalorder %v1459_v42, 7 }
  0xac   : > { %v479_v33 = vsel %vm437_vm3, %v478_v29, %v477_v28  ;;  %v528_v34 = vand.u32 127, %v527_v31  ;;  %v530_v35 = vstv %s818_s15  ;;  %vm1165_vm14 = vmmov 1   ;;  %s1166_s15 = smov [#allocation11]  }
  0xad   : > { %v535_v59 = vsel %vm437_vm3, %v526_v54, %v519_v53  ;;  %v481_v3 = vsel %vm476_vm12, %v479_v33, %v475_v32  ;;  %vm546_vm15 = vmxor %vm400_vm5, %vm1165_vm14  ;;  %s1029_s17 = sshll.u32 %s1166_s15, 4  ;;  %s1030_s17 = int_to_ptr.vmem [resolvable:$false] %s1029_s17 }
  0xae   : > { %v537_v63 = vsel %vm400_vm5, %v535_v59, 0.0  ;;  %v531_v37 = vadd.s32 %v530_v35, %v528_v34  ;;  %v489_v39 = vrot.slane %v481_v3, 1  ;;  %p1032_p6 = scmp.lt.s32.totalorder %s1514_s16, %s1030_s17 }
  0xaf   : > { %538 = vst [vmem:[%s398_s7] sm:$0x3] %v537_v63  ;;  %s1025_s7 = scalar_lea.vmem %s1514_s16, 32 }
  0xb0   : > { %vm532_vm13 = vcmp.lt.s32.totalorder %v531_v37, 512  ;;  %p1026_p12 = scmp.ne.s32.totalorder %s1514_s16, %s1025_s7 }
  0xb1   : > { %vm547_vm0 = vmand %vm532_vm13, %vm546_vm15 }
  0xb2   : > { %p1027_p13 = pnand %p1026_p12, %p1662_p9 }
  0xb3   : > { %v906_v48 = vpop.eup %905 }
  0xb4   : > { %v908_v50 = vpop.eup %907  ;;  %v421_v51 = vrot.slane %v906_v48, 4  ;;  %p1028_p1 = pneg %p1027_p13 }
  0xb5   : > { %v427_v55 = vrot.slane %v908_v50, 4 }
  0xb6   : > { %v422_v56 = vadd.f32 %v906_v48, %v421_v51 }
  0xb7   : > { %v428_v60 = vadd.f32 %v908_v50, %v427_v55 }
  0xb8   : > { %v423_v4 = vrot.slane %v422_v56, 2 }
  0xb9   : > { %v429_v5 = vrot.slane %v428_v60, 2 }
  0xba   : > { %v424_v8 = vadd.f32 %v423_v4, %v422_v56 }
  0xbb   : > { %v430_v11 = vadd.f32 %v429_v5, %v428_v60 }
  0xbc   : > { %v425_v12 = vrot.slane %v424_v8, 1 }
  0xbd   : > { %v431_v14 = vrot.slane %v430_v11, 1 }
  0xbe   : > { %v426_v19 = vadd.f32 %v425_v12, %v424_v8 }
  0xbf   : > { %v432_v20 = vadd.f32 %v431_v14, %v430_v11 }
  0xc0   : > { %909 = vlog2.f32 %v426_v19 }
  0xc1   : > { %911 = vlog2.f32 %v432_v20 }
  0xcd   : > { %v910_v0 = vpop.eup %909 }
  0xce   : > { %v912_v36 = vpop.eup %911  ;;  %v483_v1 = vmul.f32 0.6931472, %v910_v0 }
  0xcf   : > { %v485_v38 = vmul.f32 0.6931472, %v912_v36 }
  0xd0   : > { %v486_v40 = vadd.f32 %v483_v1, %v1449_v16 }
  0xd1   : > { %v487_v41 = vadd.f32 %v485_v38, %v1451_v17 }
  0xd2   : > { %v492_v43 = vsub.f32 %v486_v40, %v481_v3 }
  0xd3   : > { %v493_v44 = vsub.f32 %v487_v41, %v489_v39 }
  0xd5   : > { %v541_v45 = vrot.slane %v493_v44, 7 }
  0xd7   : > { %v542_v16 = vsel %vm437_vm3, %v541_v45, %v492_v43 }
  0xd8   : > { %v544_v17 = vsel %vm400_vm5, %v542_v16, 0.0  ;;  %v548_v46 = vsel %vm547_vm0, %v542_v16, 0.0 }
  0xd9   : > { %545 = vst [vmem:[%s391_s12] sm:$0x3] %v544_v17  ;;  %549 = vst [vmem:[%s384_s23] sm:$0x3] %v548_v46  ;;  %s1031_s12 = scalar_lea.vmem %s1030_s17, 64 }
  0xda   : > { %p1033_p10 = scmp.lt.s32.totalorder %s1031_s12, %s1025_s7 }
  0xdc   : > { %p1034_p2 = por %p1033_p10, %p1032_p6 }
  0xde   : > { %p1035_p3 = pnand %p1034_p2, %p1028_p1 }
  0xe0   : > { %1038 = shalt.err (!%p1035_p3)
}
  0xe1   : > { %s1039_s25 = scalar_lea.hbm %s1522_s26, 32  ;;  %s1043_s19 = scalar_lea.hbm %s1629_s5, 128 }
  0xe2   : > { %p1040_p4 = scmp.ne.s32.totalorder %s1522_s26, %s1039_s25  ;;  %p1044_p11 = scmp.lt.s32.totalorder %s1522_s26, %s1629_s5 }
  0xe3   : > { %p1045_p8 = scmp.lt.s32.totalorder %s1043_s19, %s1039_s25 }
  0xe4   : > { %p1041_p5 = pnand %p1040_p4, %p1662_p9 }
  0xe5   : > { %p1046_p0 = por %p1045_p8, %p1044_p11 }
  0xe6   : > { %p1042_p7 = pneg %p1041_p5 }
  0xe8   : > { %p1047_p12 = pnand %p1046_p0, %p1042_p7 }
  0xea   : > { %1050 = shalt.err (!%p1047_p12)
}
  0xeb   : > { %836 = dma.vmem_to_hbm [thread:$0]  (%p1662_p9), %s1514_s16, 32, %s1522_s26, %s1540_s20  }
  0xec   : > { %s551_s18 = scalar_lea.sflag [#allocation4], %s1412_s29  ;;  %s1051_s1 = scalar_lea.vmem %s1517_s10, 32 }
  0xed   : > { %p1052_p13 = scmp.ne.s32.totalorder %s1517_s10, %s1051_s1  ;;  %s1167_s9 = smov [#allocation10]  }
  0xee   : > { %s1055_s7 = sshll.u32 %s1167_s9, 4  ;;  %s1056_s7 = int_to_ptr.vmem [resolvable:$false] %s1055_s7 }
  0xef   : > { %p1053_p1 = pnand %p1052_p13, %p1662_p9  ;;  %s1057_s15 = scalar_lea.vmem %s1056_s7, 64 }
  0xf0   : > { %p1058_p10 = scmp.lt.s32.totalorder %s1517_s10, %s1056_s7  ;;  %p1059_p2 = scmp.lt.s32.totalorder %s1057_s15, %s1051_s1 }
  0xf1   : > { %p1054_p6 = pneg %p1053_p1 }
  0xf2   : > { %p1060_p3 = por %p1059_p2, %p1058_p10 }
  0xf4   : > { %p1061_p4 = pnand %p1060_p3, %p1054_p6 }
  0xf6   : > { %1064 = shalt.err (!%p1061_p4)
}
  0xf7   : > { %s1065_s16 = scalar_lea.hbm %s1529_s28, 32  ;;  %s1069_s17 = scalar_lea.hbm %s1628_s4, 128 }
  0xf8   : > { %p1066_p5 = scmp.ne.s32.totalorder %s1529_s28, %s1065_s16  ;;  %p1070_p8 = scmp.lt.s32.totalorder %s1529_s28, %s1628_s4 }
  0xf9   : > { %p1071_p0 = scmp.lt.s32.totalorder %s1069_s17, %s1065_s16 }
  0xfa   : > { %p1067_p7 = pnand %p1066_p5, %p1662_p9 }
  0xfb   : > { %p1072_p12 = por %p1071_p0, %p1070_p8 }
  0xfc   : > { %p1068_p11 = pneg %p1067_p7 }
  0xfe   : > { %p1073_p13 = pnand %p1072_p12, %p1068_p11 }
 0x100   : > { %1076 = shalt.err (!%p1073_p13)
}
 0x101   : > { %835 = dma.vmem_to_hbm [thread:$0]  (%p1662_p9), %s1517_s10, 32, %s1529_s28, %s551_s18  }
 0x102   : > { %s1077_s27 = scalar_lea.vmem %s1531_s13, 32  ;;  %s1168_s23 = smov [#allocation13]  }
 0x103   : > { %p1078_p1 = scmp.ne.s32.totalorder %s1531_s13, %s1077_s27  ;;  %s1081_s19 = sshll.u32 %s1168_s23, 4  ;;  %s1082_s19 = int_to_ptr.vmem [resolvable:$false] %s1081_s19 }
 0x104   : > { %s1083_s14 = scalar_lea.vmem %s1082_s19, 64  ;;  %p1084_p2 = scmp.lt.s32.totalorder %s1531_s13, %s1082_s19 }
 0x105   : > { %p1079_p6 = pnand %p1078_p1, %p1662_p9  ;;  %p1085_p3 = scmp.lt.s32.totalorder %s1083_s14, %s1077_s27 }
 0x107   : > { %p1080_p10 = pneg %p1079_p6  ;;  %p1086_p4 = por %p1085_p3, %p1084_p2 }
 0x109   : > { %p1087_p5 = pnand %p1086_p4, %p1080_p10 }
 0x10b   : > { %1090 = shalt.err (!%p1087_p5)
}
 0x10c   : > { %s1091_s11 = scalar_lea.hbm %s1536_s30, 32  ;;  %s1095_s18 = scalar_lea.hbm %s1630_s6, 128 }
 0x10d   : > { %p1092_p7 = scmp.ne.s32.totalorder %s1536_s30, %s1091_s11  ;;  %p1096_p0 = scmp.lt.s32.totalorder %s1536_s30, %s1630_s6 }
 0x10e   : > { %p1097_p12 = scmp.lt.s32.totalorder %s1095_s18, %s1091_s11 }
 0x10f   : > { %p1093_p11 = pnand %p1092_p7, %p1662_p9 }
 0x110   : > { %p1098_p13 = por %p1097_p12, %p1096_p0 }
 0x111   : > { %p1094_p8 = pneg %p1093_p11 }
 0x113   : > { %p1099_p1 = pnand %p1098_p13, %p1094_p8 }
 0x115   : > { %1102 = shalt.err (!%p1099_p1)
}
 0x116   : > { %837 = dma.vmem_to_hbm [thread:$0]  (%p1662_p9), %s1531_s13, 32, %s1536_s30, %s1540_s20  }
 0x117 PF: > { %s1663_s7 = sld [smem:[#allocation22_spill]]  ;;  %p865_p6 = scmp.ge.s32.totalorder %s1153_s24, 2 }
 0x118   : > { %s612_s15 = sand.u32 1, %s1141_s21  }
 0x119   : > { %s613_s16 = scalar_lea.sflag [#allocation4], %s612_s15 }
 0x11d   : > { %p1664_p10 = scmp.ne.s32.totalorder %s1663_s7, 0 }
 0x11f   : > { %p855_p2 = pnand %p865_p6, %p1664_p10 }
 0x121   : > { %p856_p3 = pneg %p855_p2 }
 0x123   : > { %1132 = dma.done.wait (%p856_p3), %s613_s16, 32  }
 0x124   : > { %1134 = vsyncadd (%p856_p3), %s613_s16, 4294967264  ;;  %s1665_s29 = sadd.s32 4294967294, %s1153_s24  }
 0x125   : > { %s621_s26 = sand.u32 1, %s1665_s29  }
 0x126   : > { %s622_s8 = scalar_lea.sflag [#allocation12], %s621_s26 }
 0x127   : > { %1136 = dma.done.wait (%p856_p3), %s622_s8, 64  }
 0x128   : > { %1138 = vsyncadd (%p856_p3), %s622_s8, 4294967232  ;;  %s1666_s24 = sld [smem:[#allocation20_spill]]  ;;  %s1669_s21 = smov %s1145_s22 }
 0x129   : > { %s1667_s13 = sld [smem:[#allocation19_spill]] }
 0x12a   : > { %s1668_s23 = sld [smem:[#allocation21_spill]] }
 0x12e   : > { %p29_p9 = scmp.ge.s32.totalorder %s1666_s24, 6  }
 0x12f   : > { %s1670_s22 = smov %s1667_s13 }
 0x130   :  { %31 = sbr.rel (!%p29_p9) target bundleno = 13 (0xd), region = 150 }
 0x135   :  { %636 = vsyncpa [#allocation3], 1 }
 0x136   :  { %638 = vsyncpa [#allocation3 + $0x1], 1 }
 0x137   :  { %639 = vsyncpa [#allocation6], 1 }
 0x138   :  { %641 = vsyncpa [#allocation6 + $0x1], 1 }
 0x139   :  { %642 = vsyncpa [#allocation9], 1 }
 0x13a   :  { %644 = vsyncpa [#allocation9 + $0x1], 1 }
 0x13b   :  { %645 = vsyncpa [#allocation4], 1 }
 0x13c   :  { %647 = vsyncpa [#allocation4 + $0x1], 1 }
 0x13d   :  { %648 = vsyncpa [#allocation12], 1 }
 0x13e   :  { %650 = vsyncpa [#allocation12 + $0x1], 1 }

</bundles_post_ra>
